<compile_context>
chip_gen: v5e
topology: v5e:2x2
jax: 0.10.0
libtpu: 0.0.40
codegen_flags: <defaults>
</compile_context>

<pallas_src>
import functools

import jax
import jax.numpy as jnp
import numpy as np
from jax.experimental import pallas as pl
from jax.experimental.pallas import tpu as pltpu

BN_EPS = 1e-5
LANES = 128


# ---------------------------- fused Pallas kernel ----------------------------

def fused_cnn_kernel(*refs, conv_cfg, n_linear, b_tile):
    """One grid step == B_TILE samples.

    refs layout (positional, as passed by pallas_call):
      [0]                x_ref    (1, H*B, W*Cin)           rows ordered h*B + b
      [1 .. 3*n_conv]    per conv layer:
                           c_ref    (K, Win*Cin, Wout*Cout) folded conv weights
                           sel_ref  (2, Wout*Cout, Wp*Cout) even/odd 0/1 pool selectors
                           post_ref (3, Wp*Cout)            bias / BN-scale / BN-shift
      [.. + 2*n_linear]  (w_j, b_j) per linear layer (first has the spatial mean
                           folded in, last is zero-padded to 128 output lanes)
      [last]             out_ref  (B, out_lanes)
    """
    f32 = jnp.float32
    B = b_tile
    n_conv = len(conv_cfg)
    x_ref = refs[0]
    conv_refs = refs[1:1 + 3 * n_conv]
    lin_refs = refs[1 + 3 * n_conv:1 + 3 * n_conv + 2 * n_linear]
    out_ref = refs[1 + 3 * n_conv + 2 * n_linear]

    act = x_ref[0]                                    # (H*B, W*Cin), stays in registers
    for li, (k, cout, ho, wo, hp, wp) in enumerate(conv_cfg):
        c_ref, sel_ref, post_ref = conv_refs[3 * li:3 * li + 3]
        wcin = act.shape[1]
        h_in = act.shape[0] // B
        act3 = act.reshape(h_in, B, wcin)             # layout-preserving (B % 8 == 0)

        # Conv2d (VALID, cross-correlation) as K row-shifted MXU matmuls, M = Ho*B.
        # (review #10: the K matmuls could be fused via a lane-concat slab; kept
        #  separate -- the unaligned lane shifts of the concat roughly match the
        #  saved accumulate adds at these sizes.)
        acc = jnp.zeros((ho * B, wo * cout), f32)
        for kh in range(k):
            slab = act3[kh:kh + ho].reshape(ho * B, wcin)
            acc = acc + jnp.dot(slab, c_ref[kh], preferred_element_type=f32)

        # MaxPool2d(2), H direction: register-resident, tile-aligned slices only.
        a3 = acc[:2 * hp * B, :].reshape(hp, 2 * B, wo * cout)
        rm = jnp.maximum(a3[:, :B, :], a3[:, B:, :]).reshape(hp * B, wo * cout)

        # MaxPool2d(2), W direction: exact even/odd 0/1 selection matmuls (MXU).
        pooled = jnp.maximum(
            jnp.dot(rm, sel_ref[0], preferred_element_type=f32),
            jnp.dot(rm, sel_ref[1], preferred_element_type=f32))   # (Hp*B, Wp*Cout)

        # conv bias (commutes with max) -> ReLU -> BatchNorm(eval) scale/shift, fused.
        post = post_ref[...]
        act = jnp.maximum(pooled + post[0:1, :], 0.0) * post[1:2, :] + post[2:3, :]

    # Spatial mean: sum over Hp here (plain vreg adds); the Wp-block sum and the
    # 1/(Hp*Wp) factor are folded into the tiled first Linear weight.
    _, cout, _, _, hp, wp = conv_cfg[-1]
    feat = jnp.sum(act.reshape(hp, B, wp * cout), axis=0)          # (B, Wp*Cout)

    # Linear -> ReLU -> ... -> Linear (no activation after the last one).
    z = feat
    for j in range(n_linear):
        w_ref, b_ref = lin_refs[2 * j], lin_refs[2 * j + 1]
        z = jnp.dot(z, w_ref[...], preferred_element_type=f32) + b_ref[...]
        if j != n_linear - 1:
            z = jnp.maximum(z, 0.0)
    out_ref[...] = z.astype(out_ref.dtype)


# ---------------------------- host-side weight prep (run once) ----------------------------

def prepare_params(params, input_hw):
    """Weight-only preprocessing; amortized outside the hot path."""
    h, w = input_hw
    conv_inputs, conv_cfg = [], []
    for layer in params["convs"]:
        wgt = np.asarray(layer["w"], np.float32)       # PyTorch OIHW: (Cout, Cin, K, K)
        cout, cin, k, _ = wgt.shape
        ho, wo = h - k + 1, w - k + 1
        hp, wp = ho // 2, wo // 2

        # Fold the kw shift + Cin contraction into C[kh] so the kernel's
        #   acc += act[kh:kh+Ho, :] @ C[kh]
        # realizes the full Conv2d: C[kh][wi*Cin+ci, o*Cout+co] = W[co, ci, kh, wi-o].
        c = np.zeros((k, w * cin, wo * cout), np.float32)
        for kh in range(k):
            for kw in range(k):
                for o in range(wo):
                    wi = o + kw
                    c[kh, wi * cin:(wi + 1) * cin, o * cout:(o + 1) * cout] = wgt[:, :, kh, kw].T

        # Exact 0/1 selectors for the W-direction MaxPool (even / odd w-blocks).
        sel = np.zeros((2, wo * cout, wp * cout), np.float32)
        for par in range(2):
            for cc in range(wp):
                for ch in range(cout):
                    sel[par, (2 * cc + par) * cout + ch, cc * cout + ch] = 1.0

        # BatchNorm2d (eval) folded into per-channel scale/shift, tiled over Wp lanes.
        gamma = np.asarray(layer["gamma"], np.float32)
        var = np.asarray(layer["var"], np.float32)
        beta = np.asarray(layer["beta"], np.float32)
        mean = np.asarray(layer["mean"], np.float32)
        bias = np.asarray(layer["b"], np.float32)
        scale = gamma / np.sqrt(var + BN_EPS)
        shift = beta - mean * scale
        post = np.stack([np.tile(bias, wp), np.tile(scale, wp),
                         np.tile(shift, wp)]).astype(np.float32)

        conv_inputs += [jnp.asarray(c), jnp.asarray(sel), jnp.asarray(post)]
        conv_cfg.append((int(k), int(cout), int(ho), int(wo), int(hp), int(wp)))
        h, w = hp, wp

    lin_inputs = []
    n_lin = len(params["linears"])
    inv_spatial = 1.0 / float(h * w)
    for j, lin in enumerate(params["linears"]):
        wt = np.asarray(lin["w"], np.float32).T            # (in, out)
        b = np.asarray(lin["b"], np.float32).reshape(1, -1)
        if j == 0:
            # Fold the Wp-block sum and the 1/(Hp*Wp) of the spatial mean into W1;
            # feature lane layout is w*Cout + c, so stack Wp copies of W1^T.
            wt = np.tile(wt, (w, 1)) * inv_spatial
        if j == n_lin - 1:
            pad = (-wt.shape[1]) % LANES                   # lane-dense final store
            wt = np.pad(wt, ((0, 0), (0, pad)))
            b = np.pad(b, ((0, 0), (0, pad)))
        lin_inputs += [jnp.asarray(wt), jnp.asarray(b)]
    return tuple(conv_inputs + lin_inputs), tuple(conv_cfg)


# ---------------------------- pallas_call wrapper ----------------------------

def cnn_forward_impl(x_nchw, prepped, *, conv_cfg, n_linear, n_classes, b_tile=8):
    assert b_tile % 8 == 0, "b_tile must be a multiple of 8 (sublane-aligned reshapes)"
    n, cin, h, w = x_nchw.shape
    out_lanes = int(prepped[-2].shape[1])

    n_pad = pl.cdiv(n, b_tile) * b_tile
    nb = n_pad // b_tile
    xp = jnp.pad(x_nchw.astype(jnp.float32), ((0, n_pad - n), (0, 0), (0, 0), (0, 0)))
    # NCHW -> (nb, H*B_TILE, W*Cin): per block, rows ordered h*B + b and channels
    # lane-minor inside each spatial column, so every kernel slice is tile-aligned.
    xb = (xp.reshape(nb, b_tile, cin, h, w)
            .transpose(0, 3, 1, 4, 2)
            .reshape(nb, h * b_tile, w * cin))

    kernel = functools.partial(fused_cnn_kernel, conv_cfg=conv_cfg,
                               n_linear=n_linear, b_tile=b_tile)

    def whole(arr):
        nd = arr.ndim
        return pl.BlockSpec(tuple(int(d) for d in arr.shape),
                            lambda i, _nd=nd: (0,) * _nd)

    in_specs = [pl.BlockSpec((1, h * b_tile, w * cin), lambda i: (i, 0, 0))]
    in_specs += [whole(a) for a in prepped]

    out = pl.pallas_call(
        kernel,
        out_shape=jax.ShapeDtypeStruct((n_pad, out_lanes), jnp.float32),
        grid_spec=pltpu.PrefetchScalarGridSpec(
            num_scalar_prefetch=0,
            grid=(nb,),
            in_specs=in_specs,
            out_specs=pl.BlockSpec((b_tile, out_lanes), lambda i: (i, 0))),
        compiler_params=pltpu.CompilerParams(dimension_semantics=("parallel",)),
    )(xb, *prepped)
    return out[:n, :n_classes]


# ---------------------------- deterministic params ----------------------------

def init_params(key):
    # CNN defaults: conv channels [1, 10, 20], kernel sizes [5, 3], conv_order='pan',
    # linear features [20, 15, 10].
    ks = iter(jax.random.split(key, 32))

    def nrm(shape, scale=0.1):
        return (scale * jax.random.normal(next(ks), shape)).astype(jnp.float32)

    convs = []
    chans, ksizes = [1, 10, 20], [5, 3]
    for cin, cout, k in zip(chans[:-1], chans[1:], ksizes):
        convs.append(dict(
            w=nrm((cout, cin, k, k)),                      # PyTorch OIHW layout
            b=nrm((cout,)),
            gamma=1.0 + nrm((cout,)),
            beta=nrm((cout,)),
            mean=nrm((cout,)),
            var=jax.random.uniform(next(ks), (cout,), jnp.float32, 0.5, 1.5),
        ))

    feats = [20, 15, 10]
    linears = [dict(w=nrm((fout, fin)), b=nrm((fout,)))
               for fin, fout in zip(feats[:-1], feats[1:])]
    return dict(convs=convs, linears=linears)


# ---------------------------- pure-JAX reference ----------------------------

def reference_forward(x_nchw, params):
    x = x_nchw.astype(jnp.float32)
    for layer in params["convs"]:
        x = jax.lax.conv_general_dilated(
            x, layer["w"], (1, 1), "VALID",
            dimension_numbers=("NCHW", "OIHW", "NCHW"),
            precision=jax.lax.Precision.HIGHEST)
        x = x + layer["b"][None, :, None, None]
        x = jax.lax.reduce_window(x, -jnp.inf, jax.lax.max,
                                  (1, 1, 2, 2), (1, 1, 2, 2), "VALID")
        x = jnp.maximum(x, 0.0)
        inv = jax.lax.rsqrt(layer["var"] + BN_EPS)
        x = ((x - layer["mean"][None, :, None, None]) * inv[None, :, None, None]
             * layer["gamma"][None, :, None, None] + layer["beta"][None, :, None, None])
    feat = x.mean(axis=(2, 3))
    l0, l1 = params["linears"]
    h = jnp.maximum(jnp.dot(feat, l0["w"].T, precision=jax.lax.Precision.HIGHEST) + l0["b"], 0.0)
    return jnp.dot(h, l1["w"].T, precision=jax.lax.Precision.HIGHEST) + l1["b"]


# ---------------------------- main ----------------------------

if __name__ == "__main__":
    key = jax.random.PRNGKey(0)
    pkey, xkey = jax.random.split(key)
    params = init_params(pkey)
    # batch=16 so batch-blocking with B_TILE=8 leaves a 2-step "parallel" grid
    # (one block per TensorCore on v7x).
    x = jax.random.normal(xkey, (16, 1, 16, 16), jnp.float32)   # NCHW, like PyTorch

    prepped, conv_cfg = prepare_params(params, input_hw=(16, 16))
    fwd = jax.jit(functools.partial(
        cnn_forward_impl, conv_cfg=conv_cfg,
        n_linear=len(params["linears"]),
        n_classes=int(params["linears"][-1]["w"].shape[0]),
        b_tile=8))

    out = jax.block_until_ready(fwd(x, prepped))
    assert out.shape == (16, 10), out.shape

    ref = jax.block_until_ready(reference_forward(x, params))
    err = float(jnp.max(jnp.abs(out - ref)))
    assert err < 2e-3, f"mismatch vs reference: {err}"

    print("KERNEL_OK")
</pallas_src>

<mosaic_0001>
module attributes {stable_mosaic.version = 11 : i64} {
  func.func @fused_cnn_kernel(%arg0: i32, %arg1: memref<1x128x16xf32, #tpu.memory_space<vmem>>, %arg2: memref<5x16x120xf32, #tpu.memory_space<vmem>>, %arg3: memref<2x120x60xf32, #tpu.memory_space<vmem>>, %arg4: memref<3x60xf32, #tpu.memory_space<vmem>>, %arg5: memref<3x60x80xf32, #tpu.memory_space<vmem>>, %arg6: memref<2x80x40xf32, #tpu.memory_space<vmem>>, %arg7: memref<3x40xf32, #tpu.memory_space<vmem>>, %arg8: memref<40x15xf32, #tpu.memory_space<vmem>>, %arg9: memref<1x15xf32, #tpu.memory_space<vmem>>, %arg10: memref<15x128xf32, #tpu.memory_space<vmem>>, %arg11: memref<1x128xf32, #tpu.memory_space<vmem>>, %arg12: memref<8x128xf32, #tpu.memory_space<vmem>>) attributes {dimension_semantics = [#tpu.dimension_semantics<parallel>], iteration_bounds = array<i64: 2>, scalar_prefetch = 0 : i64, scratch_operands = 0 : i64, tpu.core_type = #tpu.core_type<tc>, window_params = [{transform_indices = @transform_0, window_bounds = array<i64: 1, 128, 16>}, {pipeline_mode = #tpu.pipeline_mode<synchronous>, transform_indices = @transform_1, window_bounds = array<i64: 5, 16, 120>}, {pipeline_mode = #tpu.pipeline_mode<synchronous>, transform_indices = @transform_2, window_bounds = array<i64: 2, 120, 60>}, {pipeline_mode = #tpu.pipeline_mode<synchronous>, transform_indices = @transform_3, window_bounds = array<i64: 3, 60>}, {pipeline_mode = #tpu.pipeline_mode<synchronous>, transform_indices = @transform_4, window_bounds = array<i64: 3, 60, 80>}, {pipeline_mode = #tpu.pipeline_mode<synchronous>, transform_indices = @transform_5, window_bounds = array<i64: 2, 80, 40>}, {pipeline_mode = #tpu.pipeline_mode<synchronous>, transform_indices = @transform_6, window_bounds = array<i64: 3, 40>}, {pipeline_mode = #tpu.pipeline_mode<synchronous>, transform_indices = @transform_7, window_bounds = array<i64: 40, 15>}, {pipeline_mode = #tpu.pipeline_mode<synchronous>, transform_indices = @transform_8, window_bounds = array<i64: 1, 15>}, {pipeline_mode = #tpu.pipeline_mode<synchronous>, transform_indices = @transform_9, window_bounds = array<i64: 15, 128>}, {pipeline_mode = #tpu.pipeline_mode<synchronous>, transform_indices = @transform_10, window_bounds = array<i64: 1, 128>}, {transform_indices = @transform_11, window_bounds = array<i64: 8, 128>}]} {
    %c0 = arith.constant 0 : index
    %c0_0 = arith.constant 0 : index
    %c0_1 = arith.constant 0 : index
    %0 = vector.load %arg1[%c0, %c0_0, %c0_1] : memref<1x128x16xf32, #tpu.memory_space<vmem>>, vector<1x128x16xf32>
    %1 = vector.shape_cast %0 : vector<1x128x16xf32> to vector<128x16xf32>
    %2 = vector.shape_cast %1 : vector<128x16xf32> to vector<16x8x16xf32>
    %cst = arith.constant 0.000000e+00 : f32
    %3 = vector.broadcast %cst : f32 to vector<96x120xf32>
    %4 = vector.extract_strided_slice %2 {offsets = [0, 0, 0], sizes = [12, 8, 16], strides = [1, 1, 1]} : vector<16x8x16xf32> to vector<12x8x16xf32>
    %5 = vector.shape_cast %4 : vector<12x8x16xf32> to vector<96x16xf32>
    %c0_2 = arith.constant 0 : index
    %c0_3 = arith.constant 0 : index
    %c0_4 = arith.constant 0 : index
    %6 = vector.load %arg2[%c0_2, %c0_3, %c0_4] : memref<5x16x120xf32, #tpu.memory_space<vmem>>, vector<1x16x120xf32>
    %7 = vector.shape_cast %6 : vector<1x16x120xf32> to vector<16x120xf32>
    %cst_5 = arith.constant dense<0.000000e+00> : vector<96x120xf32>
    %8 = tpu.matmul %5, %7, %cst_5 {dimension_numbers = #tpu.dot_dimension_numbers<[1], [0], [0], [1], [0, 0, 1, 1], [], []>} : vector<96x16xf32>, vector<16x120xf32>, vector<96x120xf32> -> vector<96x120xf32>
    %9 = arith.addf %3, %8 : vector<96x120xf32>
    %10 = vector.extract_strided_slice %2 {offsets = [1, 0, 0], sizes = [12, 8, 16], strides = [1, 1, 1]} : vector<16x8x16xf32> to vector<12x8x16xf32>
    %11 = vector.shape_cast %10 : vector<12x8x16xf32> to vector<96x16xf32>
    %c1 = arith.constant 1 : index
    %c0_6 = arith.constant 0 : index
    %c0_7 = arith.constant 0 : index
    %12 = vector.load %arg2[%c1, %c0_6, %c0_7] : memref<5x16x120xf32, #tpu.memory_space<vmem>>, vector<1x16x120xf32>
    %13 = vector.shape_cast %12 : vector<1x16x120xf32> to vector<16x120xf32>
    %cst_8 = arith.constant dense<0.000000e+00> : vector<96x120xf32>
    %14 = tpu.matmul %11, %13, %cst_8 {dimension_numbers = #tpu.dot_dimension_numbers<[1], [0], [0], [1], [0, 0, 1, 1], [], []>} : vector<96x16xf32>, vector<16x120xf32>, vector<96x120xf32> -> vector<96x120xf32>
    %15 = arith.addf %9, %14 : vector<96x120xf32>
    %16 = vector.extract_strided_slice %2 {offsets = [2, 0, 0], sizes = [12, 8, 16], strides = [1, 1, 1]} : vector<16x8x16xf32> to vector<12x8x16xf32>
    %17 = vector.shape_cast %16 : vector<12x8x16xf32> to vector<96x16xf32>
    %c2 = arith.constant 2 : index
    %c0_9 = arith.constant 0 : index
    %c0_10 = arith.constant 0 : index
    %18 = vector.load %arg2[%c2, %c0_9, %c0_10] : memref<5x16x120xf32, #tpu.memory_space<vmem>>, vector<1x16x120xf32>
    %19 = vector.shape_cast %18 : vector<1x16x120xf32> to vector<16x120xf32>
    %cst_11 = arith.constant dense<0.000000e+00> : vector<96x120xf32>
    %20 = tpu.matmul %17, %19, %cst_11 {dimension_numbers = #tpu.dot_dimension_numbers<[1], [0], [0], [1], [0, 0, 1, 1], [], []>} : vector<96x16xf32>, vector<16x120xf32>, vector<96x120xf32> -> vector<96x120xf32>
    %21 = arith.addf %15, %20 : vector<96x120xf32>
    %22 = vector.extract_strided_slice %2 {offsets = [3, 0, 0], sizes = [12, 8, 16], strides = [1, 1, 1]} : vector<16x8x16xf32> to vector<12x8x16xf32>
    %23 = vector.shape_cast %22 : vector<12x8x16xf32> to vector<96x16xf32>
    %c3 = arith.constant 3 : index
    %c0_12 = arith.constant 0 : index
    %c0_13 = arith.constant 0 : index
    %24 = vector.load %arg2[%c3, %c0_12, %c0_13] : memref<5x16x120xf32, #tpu.memory_space<vmem>>, vector<1x16x120xf32>
    %25 = vector.shape_cast %24 : vector<1x16x120xf32> to vector<16x120xf32>
    %cst_14 = arith.constant dense<0.000000e+00> : vector<96x120xf32>
    %26 = tpu.matmul %23, %25, %cst_14 {dimension_numbers = #tpu.dot_dimension_numbers<[1], [0], [0], [1], [0, 0, 1, 1], [], []>} : vector<96x16xf32>, vector<16x120xf32>, vector<96x120xf32> -> vector<96x120xf32>
    %27 = arith.addf %21, %26 : vector<96x120xf32>
    %28 = vector.extract_strided_slice %2 {offsets = [4, 0, 0], sizes = [12, 8, 16], strides = [1, 1, 1]} : vector<16x8x16xf32> to vector<12x8x16xf32>
    %29 = vector.shape_cast %28 : vector<12x8x16xf32> to vector<96x16xf32>
    %c4 = arith.constant 4 : index
    %c0_15 = arith.constant 0 : index
    %c0_16 = arith.constant 0 : index
    %30 = vector.load %arg2[%c4, %c0_15, %c0_16] : memref<5x16x120xf32, #tpu.memory_space<vmem>>, vector<1x16x120xf32>
    %31 = vector.shape_cast %30 : vector<1x16x120xf32> to vector<16x120xf32>
    %cst_17 = arith.constant dense<0.000000e+00> : vector<96x120xf32>
    %32 = tpu.matmul %29, %31, %cst_17 {dimension_numbers = #tpu.dot_dimension_numbers<[1], [0], [0], [1], [0, 0, 1, 1], [], []>} : vector<96x16xf32>, vector<16x120xf32>, vector<96x120xf32> -> vector<96x120xf32>
    %33 = arith.addf %27, %32 : vector<96x120xf32>
    %34 = vector.shape_cast %33 : vector<96x120xf32> to vector<6x16x120xf32>
    %35 = vector.extract_strided_slice %34 {offsets = [0, 0, 0], sizes = [6, 8, 120], strides = [1, 1, 1]} : vector<6x16x120xf32> to vector<6x8x120xf32>
    %36 = vector.extract_strided_slice %34 {offsets = [0, 8, 0], sizes = [6, 8, 120], strides = [1, 1, 1]} : vector<6x16x120xf32> to vector<6x8x120xf32>
    %37 = arith.maximumf %35, %36 : vector<6x8x120xf32>
    %38 = vector.shape_cast %37 : vector<6x8x120xf32> to vector<48x120xf32>
    %c0_18 = arith.constant 0 : index
    %c0_19 = arith.constant 0 : index
    %c0_20 = arith.constant 0 : index
    %39 = vector.load %arg3[%c0_18, %c0_19, %c0_20] : memref<2x120x60xf32, #tpu.memory_space<vmem>>, vector<1x120x60xf32>
    %40 = vector.shape_cast %39 : vector<1x120x60xf32> to vector<120x60xf32>
    %cst_21 = arith.constant dense<0.000000e+00> : vector<48x60xf32>
    %41 = tpu.matmul %38, %40, %cst_21 {dimension_numbers = #tpu.dot_dimension_numbers<[1], [0], [0], [1], [0, 0, 1, 1], [], []>} : vector<48x120xf32>, vector<120x60xf32>, vector<48x60xf32> -> vector<48x60xf32>
    %c1_22 = arith.constant 1 : index
    %c0_23 = arith.constant 0 : index
    %c0_24 = arith.constant 0 : index
    %42 = vector.load %arg3[%c1_22, %c0_23, %c0_24] : memref<2x120x60xf32, #tpu.memory_space<vmem>>, vector<1x120x60xf32>
    %43 = vector.shape_cast %42 : vector<1x120x60xf32> to vector<120x60xf32>
    %cst_25 = arith.constant dense<0.000000e+00> : vector<48x60xf32>
    %44 = tpu.matmul %38, %43, %cst_25 {dimension_numbers = #tpu.dot_dimension_numbers<[1], [0], [0], [1], [0, 0, 1, 1], [], []>} : vector<48x120xf32>, vector<120x60xf32>, vector<48x60xf32> -> vector<48x60xf32>
    %45 = arith.maximumf %41, %44 : vector<48x60xf32>
    %c0_26 = arith.constant 0 : index
    %c0_27 = arith.constant 0 : index
    %46 = vector.load %arg4[%c0_26, %c0_27] : memref<3x60xf32, #tpu.memory_space<vmem>>, vector<3x60xf32>
    %47 = vector.extract_strided_slice %46 {offsets = [0, 0], sizes = [1, 60], strides = [1, 1]} : vector<3x60xf32> to vector<1x60xf32>
    %48 = vector.broadcast %47 : vector<1x60xf32> to vector<48x60xf32>
    %49 = arith.addf %45, %48 : vector<48x60xf32>
    %cst_28 = arith.constant 0.000000e+00 : f32
    %50 = vector.broadcast %cst_28 : f32 to vector<48x60xf32>
    %51 = arith.maximumf %49, %50 : vector<48x60xf32>
    %52 = vector.extract_strided_slice %46 {offsets = [1, 0], sizes = [1, 60], strides = [1, 1]} : vector<3x60xf32> to vector<1x60xf32>
    %53 = vector.broadcast %52 : vector<1x60xf32> to vector<48x60xf32>
    %54 = arith.mulf %51, %53 : vector<48x60xf32>
    %55 = vector.extract_strided_slice %46 {offsets = [2, 0], sizes = [1, 60], strides = [1, 1]} : vector<3x60xf32> to vector<1x60xf32>
    %56 = vector.broadcast %55 : vector<1x60xf32> to vector<48x60xf32>
    %57 = arith.addf %54, %56 : vector<48x60xf32>
    %58 = vector.shape_cast %57 : vector<48x60xf32> to vector<6x8x60xf32>
    %cst_29 = arith.constant 0.000000e+00 : f32
    %59 = vector.broadcast %cst_29 : f32 to vector<32x80xf32>
    %60 = vector.extract_strided_slice %58 {offsets = [0, 0, 0], sizes = [4, 8, 60], strides = [1, 1, 1]} : vector<6x8x60xf32> to vector<4x8x60xf32>
    %61 = vector.shape_cast %60 : vector<4x8x60xf32> to vector<32x60xf32>
    %c0_30 = arith.constant 0 : index
    %c0_31 = arith.constant 0 : index
    %c0_32 = arith.constant 0 : index
    %62 = vector.load %arg5[%c0_30, %c0_31, %c0_32] : memref<3x60x80xf32, #tpu.memory_space<vmem>>, vector<1x60x80xf32>
    %63 = vector.shape_cast %62 : vector<1x60x80xf32> to vector<60x80xf32>
    %cst_33 = arith.constant dense<0.000000e+00> : vector<32x80xf32>
    %64 = tpu.matmul %61, %63, %cst_33 {dimension_numbers = #tpu.dot_dimension_numbers<[1], [0], [0], [1], [0, 0, 1, 1], [], []>} : vector<32x60xf32>, vector<60x80xf32>, vector<32x80xf32> -> vector<32x80xf32>
    %65 = arith.addf %59, %64 : vector<32x80xf32>
    %66 = vector.extract_strided_slice %58 {offsets = [1, 0, 0], sizes = [4, 8, 60], strides = [1, 1, 1]} : vector<6x8x60xf32> to vector<4x8x60xf32>
    %67 = vector.shape_cast %66 : vector<4x8x60xf32> to vector<32x60xf32>
    %c1_34 = arith.constant 1 : index
    %c0_35 = arith.constant 0 : index
    %c0_36 = arith.constant 0 : index
    %68 = vector.load %arg5[%c1_34, %c0_35, %c0_36] : memref<3x60x80xf32, #tpu.memory_space<vmem>>, vector<1x60x80xf32>
    %69 = vector.shape_cast %68 : vector<1x60x80xf32> to vector<60x80xf32>
    %cst_37 = arith.constant dense<0.000000e+00> : vector<32x80xf32>
    %70 = tpu.matmul %67, %69, %cst_37 {dimension_numbers = #tpu.dot_dimension_numbers<[1], [0], [0], [1], [0, 0, 1, 1], [], []>} : vector<32x60xf32>, vector<60x80xf32>, vector<32x80xf32> -> vector<32x80xf32>
    %71 = arith.addf %65, %70 : vector<32x80xf32>
    %72 = vector.extract_strided_slice %58 {offsets = [2, 0, 0], sizes = [4, 8, 60], strides = [1, 1, 1]} : vector<6x8x60xf32> to vector<4x8x60xf32>
    %73 = vector.shape_cast %72 : vector<4x8x60xf32> to vector<32x60xf32>
    %c2_38 = arith.constant 2 : index
    %c0_39 = arith.constant 0 : index
    %c0_40 = arith.constant 0 : index
    %74 = vector.load %arg5[%c2_38, %c0_39, %c0_40] : memref<3x60x80xf32, #tpu.memory_space<vmem>>, vector<1x60x80xf32>
    %75 = vector.shape_cast %74 : vector<1x60x80xf32> to vector<60x80xf32>
    %cst_41 = arith.constant dense<0.000000e+00> : vector<32x80xf32>
    %76 = tpu.matmul %73, %75, %cst_41 {dimension_numbers = #tpu.dot_dimension_numbers<[1], [0], [0], [1], [0, 0, 1, 1], [], []>} : vector<32x60xf32>, vector<60x80xf32>, vector<32x80xf32> -> vector<32x80xf32>
    %77 = arith.addf %71, %76 : vector<32x80xf32>
    %78 = vector.shape_cast %77 : vector<32x80xf32> to vector<2x16x80xf32>
    %79 = vector.extract_strided_slice %78 {offsets = [0, 0, 0], sizes = [2, 8, 80], strides = [1, 1, 1]} : vector<2x16x80xf32> to vector<2x8x80xf32>
    %80 = vector.extract_strided_slice %78 {offsets = [0, 8, 0], sizes = [2, 8, 80], strides = [1, 1, 1]} : vector<2x16x80xf32> to vector<2x8x80xf32>
    %81 = arith.maximumf %79, %80 : vector<2x8x80xf32>
    %82 = vector.shape_cast %81 : vector<2x8x80xf32> to vector<16x80xf32>
    %c0_42 = arith.constant 0 : index
    %c0_43 = arith.constant 0 : index
    %c0_44 = arith.constant 0 : index
    %83 = vector.load %arg6[%c0_42, %c0_43, %c0_44] : memref<2x80x40xf32, #tpu.memory_space<vmem>>, vector<1x80x40xf32>
    %84 = vector.shape_cast %83 : vector<1x80x40xf32> to vector<80x40xf32>
    %cst_45 = arith.constant dense<0.000000e+00> : vector<16x40xf32>
    %85 = tpu.matmul %82, %84, %cst_45 {dimension_numbers = #tpu.dot_dimension_numbers<[1], [0], [0], [1], [0, 0, 1, 1], [], []>} : vector<16x80xf32>, vector<80x40xf32>, vector<16x40xf32> -> vector<16x40xf32>
    %c1_46 = arith.constant 1 : index
    %c0_47 = arith.constant 0 : index
    %c0_48 = arith.constant 0 : index
    %86 = vector.load %arg6[%c1_46, %c0_47, %c0_48] : memref<2x80x40xf32, #tpu.memory_space<vmem>>, vector<1x80x40xf32>
    %87 = vector.shape_cast %86 : vector<1x80x40xf32> to vector<80x40xf32>
    %cst_49 = arith.constant dense<0.000000e+00> : vector<16x40xf32>
    %88 = tpu.matmul %82, %87, %cst_49 {dimension_numbers = #tpu.dot_dimension_numbers<[1], [0], [0], [1], [0, 0, 1, 1], [], []>} : vector<16x80xf32>, vector<80x40xf32>, vector<16x40xf32> -> vector<16x40xf32>
    %89 = arith.maximumf %85, %88 : vector<16x40xf32>
    %c0_50 = arith.constant 0 : index
    %c0_51 = arith.constant 0 : index
    %90 = vector.load %arg7[%c0_50, %c0_51] : memref<3x40xf32, #tpu.memory_space<vmem>>, vector<3x40xf32>
    %91 = vector.extract_strided_slice %90 {offsets = [0, 0], sizes = [1, 40], strides = [1, 1]} : vector<3x40xf32> to vector<1x40xf32>
    %92 = vector.broadcast %91 : vector<1x40xf32> to vector<16x40xf32>
    %93 = arith.addf %89, %92 : vector<16x40xf32>
    %cst_52 = arith.constant 0.000000e+00 : f32
    %94 = vector.broadcast %cst_52 : f32 to vector<16x40xf32>
    %95 = arith.maximumf %93, %94 : vector<16x40xf32>
    %96 = vector.extract_strided_slice %90 {offsets = [1, 0], sizes = [1, 40], strides = [1, 1]} : vector<3x40xf32> to vector<1x40xf32>
    %97 = vector.broadcast %96 : vector<1x40xf32> to vector<16x40xf32>
    %98 = arith.mulf %95, %97 : vector<16x40xf32>
    %99 = vector.extract_strided_slice %90 {offsets = [2, 0], sizes = [1, 40], strides = [1, 1]} : vector<3x40xf32> to vector<1x40xf32>
    %100 = vector.broadcast %99 : vector<1x40xf32> to vector<16x40xf32>
    %101 = arith.addf %98, %100 : vector<16x40xf32>
    %102 = vector.shape_cast %101 : vector<16x40xf32> to vector<2x8x40xf32>
    %cst_53 = arith.constant dense<0.000000e+00> : vector<8x40xf32>
    %103 = vector.multi_reduction <add>, %102, %cst_53 [0] : vector<2x8x40xf32> to vector<8x40xf32>
    %c0_54 = arith.constant 0 : index
    %c0_55 = arith.constant 0 : index
    %104 = vector.load %arg8[%c0_54, %c0_55] : memref<40x15xf32, #tpu.memory_space<vmem>>, vector<40x15xf32>
    %cst_56 = arith.constant dense<0.000000e+00> : vector<8x15xf32>
    %105 = tpu.matmul %103, %104, %cst_56 {dimension_numbers = #tpu.dot_dimension_numbers<[1], [0], [0], [1], [0, 0, 1, 1], [], []>} : vector<8x40xf32>, vector<40x15xf32>, vector<8x15xf32> -> vector<8x15xf32>
    %c0_57 = arith.constant 0 : index
    %c0_58 = arith.constant 0 : index
    %106 = vector.load %arg9[%c0_57, %c0_58] : memref<1x15xf32, #tpu.memory_space<vmem>>, vector<1x15xf32>
    %107 = vector.broadcast %106 : vector<1x15xf32> to vector<8x15xf32>
    %108 = arith.addf %105, %107 : vector<8x15xf32>
    %cst_59 = arith.constant 0.000000e+00 : f32
    %109 = vector.broadcast %cst_59 : f32 to vector<8x15xf32>
    %110 = arith.maximumf %108, %109 : vector<8x15xf32>
    %c0_60 = arith.constant 0 : index
    %c0_61 = arith.constant 0 : index
    %111 = vector.load %arg10[%c0_60, %c0_61] : memref<15x128xf32, #tpu.memory_space<vmem>>, vector<15x128xf32>
    %cst_62 = arith.constant dense<0.000000e+00> : vector<8x128xf32>
    %112 = tpu.matmul %110, %111, %cst_62 {dimension_numbers = #tpu.dot_dimension_numbers<[1], [0], [0], [1], [0, 0, 1, 1], [], []>} : vector<8x15xf32>, vector<15x128xf32>, vector<8x128xf32> -> vector<8x128xf32>
    %c0_63 = arith.constant 0 : index
    %c0_64 = arith.constant 0 : index
    %113 = vector.load %arg11[%c0_63, %c0_64] : memref<1x128xf32, #tpu.memory_space<vmem>>, vector<1x128xf32>
    %114 = vector.broadcast %113 : vector<1x128xf32> to vector<8x128xf32>
    %115 = arith.addf %112, %114 : vector<8x128xf32>
    %c0_65 = arith.constant 0 : index
    %c0_66 = arith.constant 0 : index
    %116 = vector.load %arg12[%c0_65, %c0_66] : memref<8x128xf32, #tpu.memory_space<vmem>>, vector<8x128xf32>
    tpu.vector_store %arg12[%c0_65, %c0_66], %115 {strides = array<i32>} : memref<8x128xf32, #tpu.memory_space<vmem>>, vector<8x128xf32>,
    return
  }
  func.func @transform_0(%arg0: i32) -> (i32, i32, i32) {
    %c0_i32 = arith.constant 0 : i32
    %c0_i32_0 = arith.constant 0 : i32
    %c0_i32_1 = arith.constant 0 : i32
    return %arg0, %c0_i32, %c0_i32_0 : i32, i32, i32
  }
  func.func @transform_1(%arg0: i32) -> (i32, i32, i32) {
    %c0_i32 = arith.constant 0 : i32
    %c0_i32_0 = arith.constant 0 : i32
    %c0_i32_1 = arith.constant 0 : i32
    %c0_i32_2 = arith.constant 0 : i32
    return %c0_i32, %c0_i32_0, %c0_i32_1 : i32, i32, i32
  }
  func.func @transform_2(%arg0: i32) -> (i32, i32, i32) {
    %c0_i32 = arith.constant 0 : i32
    %c0_i32_0 = arith.constant 0 : i32
    %c0_i32_1 = arith.constant 0 : i32
    %c0_i32_2 = arith.constant 0 : i32
    return %c0_i32, %c0_i32_0, %c0_i32_1 : i32, i32, i32
  }
  func.func @transform_3(%arg0: i32) -> (i32, i32) {
    %c0_i32 = arith.constant 0 : i32
    %c0_i32_0 = arith.constant 0 : i32
    %c0_i32_1 = arith.constant 0 : i32
    return %c0_i32, %c0_i32_0 : i32, i32
  }
  func.func @transform_4(%arg0: i32) -> (i32, i32, i32) {
    %c0_i32 = arith.constant 0 : i32
    %c0_i32_0 = arith.constant 0 : i32
    %c0_i32_1 = arith.constant 0 : i32
    %c0_i32_2 = arith.constant 0 : i32
    return %c0_i32, %c0_i32_0, %c0_i32_1 : i32, i32, i32
  }
  func.func @transform_5(%arg0: i32) -> (i32, i32, i32) {
    %c0_i32 = arith.constant 0 : i32
    %c0_i32_0 = arith.constant 0 : i32
    %c0_i32_1 = arith.constant 0 : i32
    %c0_i32_2 = arith.constant 0 : i32
    return %c0_i32, %c0_i32_0, %c0_i32_1 : i32, i32, i32
  }
  func.func @transform_6(%arg0: i32) -> (i32, i32) {
    %c0_i32 = arith.constant 0 : i32
    %c0_i32_0 = arith.constant 0 : i32
    %c0_i32_1 = arith.constant 0 : i32
    return %c0_i32, %c0_i32_0 : i32, i32
  }
  func.func @transform_7(%arg0: i32) -> (i32, i32) {
    %c0_i32 = arith.constant 0 : i32
    %c0_i32_0 = arith.constant 0 : i32
    %c0_i32_1 = arith.constant 0 : i32
    return %c0_i32, %c0_i32_0 : i32, i32
  }
  func.func @transform_8(%arg0: i32) -> (i32, i32) {
    %c0_i32 = arith.constant 0 : i32
    %c0_i32_0 = arith.constant 0 : i32
    %c0_i32_1 = arith.constant 0 : i32
    return %c0_i32, %c0_i32_0 : i32, i32
  }
  func.func @transform_9(%arg0: i32) -> (i32, i32) {
    %c0_i32 = arith.constant 0 : i32
    %c0_i32_0 = arith.constant 0 : i32
    %c0_i32_1 = arith.constant 0 : i32
    return %c0_i32, %c0_i32_0 : i32, i32
  }
  func.func @transform_10(%arg0: i32) -> (i32, i32) {
    %c0_i32 = arith.constant 0 : i32
    %c0_i32_0 = arith.constant 0 : i32
    %c0_i32_1 = arith.constant 0 : i32
    return %c0_i32, %c0_i32_0 : i32, i32
  }
  func.func @transform_11(%arg0: i32) -> (i32, i32) {
    %c0_i32 = arith.constant 0 : i32
    %c0_i32_0 = arith.constant 0 : i32
    return %arg0, %c0_i32 : i32, i32
  }
}

</mosaic_0001>

<bundles_post_ra>
// kernel: cnn_forward_impl.1
= control target key start
LH: loop header
LB: loop body
LE: loop exit
PB: predicated region body
PF: predicated region fallthrough
CT: control target
= control target key end

     0   :  { %s2153_s0 = inlined_call_operand.vmem [shape: f32[2,128,16], index: 0, kind: input, shape index: {}]   ;;  %s2154_s1 = inlined_call_operand.vmem [shape: f32[5,16,120], index: 1, kind: input, shape index: {}]   ;;  %s2155_s2 = inlined_call_operand.vmem [shape: f32[2,120,60], index: 2, kind: input, shape index: {}]   ;;  %s2156_s3 = inlined_call_operand.vmem [shape: f32[3,60], index: 3, kind: input, shape index: {}]   ;;  %s2157_s4 = inlined_call_operand.vmem [shape: f32[3,60,80], index: 4, kind: input, shape index: {}]   ;;  %s2158_s5 = inlined_call_operand.vmem [shape: f32[2,80,40], index: 5, kind: input, shape index: {}]   ;;  %s2159_s6 = inlined_call_operand.vmem [shape: f32[3,40], index: 6, kind: input, shape index: {}]   ;;  %s2160_s7 = inlined_call_operand.vmem [shape: f32[40,15], index: 7, kind: input, shape index: {}]   ;;  %s2161_s8 = inlined_call_operand.vmem [shape: f32[1,15], index: 8, kind: input, shape index: {}]   ;;  %s2162_s9 = inlined_call_operand.vmem [shape: f32[15,128], index: 9, kind: input, shape index: {}]   ;;  %s2163_s10 = inlined_call_operand.vmem [shape: f32[1,128], index: 10, kind: input, shape index: {}]   ;;  %s2164_s11 = inlined_call_operand.hbm [shape: f32[16,128], index: 11, kind: output, shape index: {}]  }
   0x1   :  { %2165 = sst [smem:[#allocation6_spill]] %s2153_s0 }
   0x2   :  { %2166 = sst [smem:[#allocation7_spill]] %s2154_s1 }
   0x3   :  { %16 = vsyncpa [#allocation3], 0 }
   0x4   :  { %18 = vsyncpa [#allocation3 + $0x1], 0  ;;  %s1630_s17 = smov 0   ;;  %s1632_s18 = smov 0  }
   0x5   :  { %s1634_s19 = smov 0   ;;  %s1636_s20 = smov 0  }
   0x6 LB: > { %s1651_s21 = sadd.s32 4294967295, %s1568_s20   ;;  %s1308_s22 = sadd.s32 4294967294, %s1568_s20   ;;  %s1568_s20 = sphi %s1636_s20, %s2176_s20   ;;  %s1564_s19 = sphi %s1634_s19, %s2175_s19   ;;  %s1560_s18 = sphi %s1632_s18, %s2174_s18   ;;  %s1556_s17 = sphi %s1630_s17, %s2173_s17  }
   0x7   : > { %s1655_s23 = sadd.s32 1, %s1568_s20   ;;  %s267_s24 = sadd.s32 1, %s1564_s19 }
   0x8   : > { %s264_s25 = ssub.s32 %s1568_s20, %s1655_s23  ;;  %p277_p0 = scmp.ne.s32.totalorder %s1564_s19, %s1560_s18 }
   0x9   : > { %p265_p1 = scmp.eq.s32.totalorder %s264_s25, 0  ;;  %p278_p2 = scmp.eq.s32.totalorder %s1651_s21, 1 }
   0xa   : > { %p283_p3 = scmp.ne.s32.totalorder %s1560_s18, %s1556_s17  ;;  %p284_p4 = scmp.eq.s32.totalorder %s1308_s22, 1 }
   0xb   : > { %s1666_s26 = scalar_select %p265_p1, %s1564_s19, %s267_s24  }
   0xc   : > { %p1668_p5 = por %p278_p2, %p277_p0  ;;  %p1672_p6 = por %p284_p4, %p283_p3 }
   0xd   : > { %2167 = sst [smem:[#allocation5_spill]] %s1666_s26  ;;  %p1311_p7 = scmp.ge.s32.totalorder %s1568_s20, 1 }
   0xe   : > { %p340_p8 = scmp.lt.s32.totalorder %s1568_s20, 3 }
  0x10   : > { %p341_p9 = pnand %p1311_p7, %p340_p8 }
  0x11   : > { %s2170_s1 = sld [smem:[#allocation7_spill]] (!%p341_p9)  ;;  %p380_p10 = scmp.lt.s32.totalorder (!%p341_p9), %s1651_s21, 1 }
  0x12   : > { %344 = sbr.rel (%p341_p9) target bundleno = 1049 (0x419), region = 64  ;;  %s2171_s0 = sld [smem:[#allocation6_spill]] (!%p341_p9) }
  0x13   : > { %s377_s24 = sand.u32 (!%p341_p9), 1, %s1560_s18   ;;  %s1459_s29 = sshll.u32 (!%p341_p9), %s1651_s21, 3 }
  0x14   : > { %s1312_s26 = sshll.u32 (!%p341_p9), %s377_s24, 3  ;;  %s1244_s13 = scalar_lea.hbm (!%p341_p9), %s2164_s11, %s1459_s29 }
  0x15   : > { %s1248_s22 = sshll.u32 (!%p341_p9), %s1244_s13, 4  ;;  %s1249_s22 = int_to_ptr.hbm [resolvable:$true] %s1248_s22 }
  0x17   : > { %v1316_v0 = vld [vmem:[%s2170_s1 + $0x18] sm:$0xff]  ;;  %v1315_v1 = vld [vmem:[%s2170_s1 + $0x10] sm:$0xff]  ;;  %v1370_v2 = vld [vmem:[%s2170_s1 + $0x48] sm:$0xff]  ;;  %s381_s12 = scalar_select %p380_p10, %s1651_s21, 1  ;;  %vm406_vm0 = vcmask 130048   ;;  %vm786_vm1 = vcmask 982016  }
  0x18   : > { %457 = vmatpush.msra.mxu0 %v1316_v0  ;;  %1463 = vmatpush.msra.mxu1 %v1316_v0  ;;  %v1342_v3 = vld [vmem:[%s2170_s1 + $0x28] sm:$0xff]  ;;  %v1341_v4 = vld [vmem:[%s2170_s1 + $0x20] sm:$0xff]  ;;  %v1356_v5 = vld [vmem:[%s2170_s1 + $0x38] sm:$0xff]  ;;  %vm955_vm2 = vcmask 1043456   ;;  %vm942_vm3 = vcmask 490496   ;;  %vm1083_vm4 = vcmask 654336  }
  0x19   : > { %572 = vmatpush.msra.mxu2 %v1342_v3  ;;  %643 = vmatpush.msra.mxu3 %v1356_v5  ;;  %v402_v6 = vld [vmem:[%s2170_s1 + $0x8] sm:$0xff]  ;;  %v1355_v7 = vld [vmem:[%s2170_s1 + $0x30] sm:$0xff]  ;;  %s1462_s16 = sshll.u32 %s381_s12, 7  ;;  %v401_v8 = vld [vmem:[%s2170_s1] sm:$0xff]  ;;  %vm1208_vm5 = vcmask 1046528   ;;  %vm1161_vm6 = vcmask 326656  }
  0x1a   : > { %458 = vmatpush.msra.mxu0 %v1315_v1  ;;  %1464 = vmatpush.msra.mxu1 %v1315_v1  ;;  %s1707_s25 = scalar_lea.vmem %s2171_s0, %s1462_s16  ;;  %v1369_v15 = vld [vmem:[%s2170_s1 + $0x40] sm:$0xff]  ;;  %v1403_v26 = vld [vmem:[%s2155_s2 + $0xe8] sm:$0xff]  ;;  %v785_v28 = vld [vmem:[%s2155_s2 + $0x70] sm:$0xff]  ;;  %vm1204_vm7 = vcmask 121856   ;;  %s1234_s0 = scalar_lea.sflag [#allocation3], %s377_s24 }
  0x1b   : > { %573 = vmatpush.msra.mxu2 %v1341_v4  ;;  %644 = vmatpush.msra.mxu3 %v1355_v7  ;;  %v386_v9 = vld [vmem:[%s1707_s25 + $0x8] sm:$0xff]  ;;  %v1714_v10 = vld [vmem:[%s1707_s25 + $0x60] sm:$0xff]  ;;  %v387_v11 = vld [vmem:[%s1707_s25 + $0x10] sm:$0xff]  ;;  %s1520_s1 = sshra.s32 %s1249_s22, 4  ;;  %s1526_s12 = scalar_lea.hbm %s2164_s11, 16  ;;  %s1521_s1 = int_to_ptr.hbm [resolvable:$true] %s1520_s1 }
  0x1c   : > { %714 = vmatpush.msrb.mxu0 %v1370_v2  ;;  %513 = vmatpush.msrb.mxu1 %v402_v6  ;;  %v388_v12 = vld [vmem:[%s1707_s25 + $0x18] sm:$0xff]  ;;  %v385_v13 = vld [vmem:[%s1707_s25] sm:$0xff]  ;;  %v390_v16 = vld [vmem:[%s1707_s25 + $0x28] sm:$0xff]  ;;  %s1522_s21 = scalar_lea.hbm %s1521_s1, 8  ;;  %p1527_p0 = scmp.lt.s32.totalorder %s1521_s1, %s2164_s11 }
  0x1d   : > { %1317 = vmatmul.msk.f32.vlgmr.msra.gmra.mxu0 %vm406_vm0, %v386_v9  ;;  %1328 = vmatmul.msk.f32.vlgmr.msra.gmra.mxu1 %vm406_vm0, %v1714_v10  ;;  %v389_v14 = vld [vmem:[%s1707_s25 + $0x20] sm:$0xff]  ;;  %v391_v17 = vld [vmem:[%s1707_s25 + $0x30] sm:$0xff]  ;;  %v392_v18 = vld [vmem:[%s1707_s25 + $0x38] sm:$0xff]  ;;  %p1523_p11 = scmp.ne.s32.totalorder %s1521_s1, %s1522_s21  ;;  %p1528_p1 = scmp.lt.s32.totalorder %s1526_s12, %s1522_s21 }
  0x1e   : > { %1343 = vmatmul.msk.f32.vlgmr.msra.gmra.mxu2 %vm406_vm0, %v387_v11  ;;  %1357 = vmatmul.msk.f32.vlgmr.msra.gmra.mxu3 %vm406_vm0, %v388_v12  ;;  %v393_v19 = vld [vmem:[%s1707_s25 + $0x40] sm:$0xff]  ;;  %v394_v20 = vld [vmem:[%s1707_s25 + $0x48] sm:$0xff]  ;;  %v395_v21 = vld [vmem:[%s1707_s25 + $0x50] sm:$0xff] }
  0x1f   : > { %514 = vmatpush.msrb.mxu1 %v401_v8  ;;  %715 = vmatpush.msrb.mxu0 %v1369_v15  ;;  %v396_v22 = vld [vmem:[%s1707_s25 + $0x58] sm:$0xff]  ;;  %v398_v23 = vld [vmem:[%s1707_s25 + $0x68] sm:$0xff]  ;;  %v399_v24 = vld [vmem:[%s1707_s25 + $0x70] sm:$0xff]  ;;  %p1524_p12 = pnand %p1523_p11, %p1668_p5  ;;  %p1529_p2 = por %p1528_p1, %p1527_p0 }
  0x20   : > { %857 = vmatpush.msrb.mxu2 %v1403_v26  ;;  %v1402_v29 = vld [vmem:[%s2155_s2 + $0xe0] sm:$0xff]  ;;  %v784_v31 = vld [vmem:[%s2155_s2 + $0x68] sm:$0xff]  ;;  %v1401_v32 = vld [vmem:[%s2155_s2 + $0xd8] sm:$0xff] }
  0x21   : > { %806 = vmatpush.msra.mxu1 %v785_v28  ;;  %v783_v34 = vld [vmem:[%s2155_s2 + $0x60] sm:$0xff]  ;;  %v1400_v35 = vld [vmem:[%s2155_s2 + $0xd0] sm:$0xff]  ;;  %v782_v36 = vld [vmem:[%s2155_s2 + $0x58] sm:$0xff]  ;;  %p1525_p13 = pneg %p1524_p12 }
  0x22   : > { %858 = vmatpush.msrb.mxu2 %v1402_v29  ;;  %v1399_v37 = vld [vmem:[%s2155_s2 + $0xc8] sm:$0xff]  ;;  %v781_v39 = vld [vmem:[%s2155_s2 + $0x50] sm:$0xff]  ;;  %v1398_v40 = vld [vmem:[%s2155_s2 + $0xc0] sm:$0xff] }
  0x23   : > { %807 = vmatpush.msra.mxu1 %v784_v31  ;;  %v780_v42 = vld [vmem:[%s2155_s2 + $0x48] sm:$0xff]  ;;  %v1397_v44 = vld [vmem:[%s2155_s2 + $0xb8] sm:$0xff]  ;;  %v779_v47 = vld [vmem:[%s2155_s2 + $0x40] sm:$0xff]  ;;  %p1530_p3 = pnand %p1529_p2, %p1525_p13 }
  0x24   : > { %859 = vmatpush.msrb.mxu2 %v1401_v32  ;;  %v400_v46 = vld [vmem:[%s1707_s25 + $0x78] sm:$0xff]  ;;  %v1396_v48 = vld [vmem:[%s2155_s2 + $0xb0] sm:$0xff]  ;;  %v1395_v52 = vld [vmem:[%s2155_s2 + $0xa8] sm:$0xff]  ;;  %s379_s25 = scalar_lea.vmem [#allocation2], %s1312_s26 }
  0x25   : > { %1318 = vmatmul.msk.f32.gmra.mxu0 %vm406_vm0, %v387_v11  ;;  %1329 = vmatmul.msk.f32.vlgmr.msrb.gmra.mxu1 %vm406_vm0, %v385_v13  ;;  %v778_v49 = vld [vmem:[%s2155_s2 + $0x38] sm:$0xff]  ;;  %v777_v51 = vld [vmem:[%s2155_s2 + $0x30] sm:$0xff]  ;;  %v776_v54 = vld [vmem:[%s2155_s2 + $0x28] sm:$0xff]  ;;  %s1246_s16 = sshll.u32 %s379_s25, 4  ;;  %s1247_s16 = int_to_ptr.vmem [resolvable:$true] %s1246_s16 }
  0x26   : > { %1344 = vmatmul.msk.f32.gmra.mxu2 %vm406_vm0, %v388_v12  ;;  %1358 = vmatmul.msk.f32.gmra.mxu3 %vm406_vm0, %v389_v14  ;;  %v1394_v55 = vld [vmem:[%s2155_s2 + $0xa0] sm:$0xff]  ;;  %v1393_v58 = vld [vmem:[%s2155_s2 + $0x98] sm:$0xff]  ;;  %v1392_v60 = vld [vmem:[%s2155_s2 + $0x90] sm:$0xff] }
  0x27   : > { %808 = vmatpush.msra.mxu1 %v783_v34  ;;  %860 = vmatpush.msrb.mxu2 %v1400_v35  ;;  %v775_v57 = vld [vmem:[%s2155_s2 + $0x20] sm:$0xff]  ;;  %v774_v59 = vld [vmem:[%s2155_s2 + $0x18] sm:$0xff]  ;;  %v773_v62 = vld [vmem:[%s2155_s2 + $0x10] sm:$0xff] }
  0x28   : > { %v1391_v63 = vld [vmem:[%s2155_s2 + $0x88] sm:$0xff]  ;;  %v1390_v3 = vld [vmem:[%s2155_s2 + $0x80] sm:$0xff]  ;;  %v1389_v5 = vld [vmem:[%s2155_s2 + $0x78] sm:$0xff] }
  0x29   : > { %809 = vmatpush.msra.mxu1 %v782_v36  ;;  %861 = vmatpush.msrb.mxu2 %v1399_v37  ;;  %v772_v2 = vld [vmem:[%s2155_s2 + $0x8] sm:$0xff]  ;;  %v771_v4 = vld [vmem:[%s2155_s2] sm:$0xff] }
  0x2b   : > { %810 = vmatpush.msra.mxu1 %v781_v39  ;;  %862 = vmatpush.msrb.mxu2 %v1398_v40 }
  0x2d   : > { %1319 = vmatmul.msk.f32.gmra.mxu0 %vm406_vm0, %v388_v12  ;;  %1330 = vmatmul.msk.f32.gmra.mxu1 %vm406_vm0, %v386_v9 }
  0x2e   : > { %1345 = vmatmul.msk.f32.gmra.mxu2 %vm406_vm0, %v389_v14  ;;  %1359 = vmatmul.msk.f32.gmra.mxu3 %vm406_vm0, %v390_v16 }
  0x2f   : > { %811 = vmatpush.msra.mxu1 %v780_v42  ;;  %863 = vmatpush.msrb.mxu2 %v1397_v44 }
  0x31   : > { %812 = vmatpush.msra.mxu1 %v779_v47  ;;  %864 = vmatpush.msrb.mxu2 %v1396_v48 }
  0x33   : > { %813 = vmatpush.msra.mxu1 %v778_v49  ;;  %865 = vmatpush.msrb.mxu2 %v1395_v52 }
  0x35   : > { %1320 = vmatmul.msk.f32.gmra.mxu0 %vm406_vm0, %v389_v14  ;;  %1331 = vmatmul.msk.f32.gmra.mxu1 %vm406_vm0, %v387_v11 }
  0x36   : > { %1346 = vmatmul.msk.f32.gmra.mxu2 %vm406_vm0, %v390_v16  ;;  %1360 = vmatmul.msk.f32.gmra.mxu3 %vm406_vm0, %v391_v17 }
  0x37   : > { %814 = vmatpush.msra.mxu1 %v777_v51  ;;  %866 = vmatpush.msrb.mxu2 %v1394_v55 }
  0x39   : > { %815 = vmatpush.msra.mxu1 %v776_v54  ;;  %867 = vmatpush.msrb.mxu2 %v1393_v58 }
  0x3b   : > { %816 = vmatpush.msra.mxu1 %v775_v57  ;;  %868 = vmatpush.msrb.mxu2 %v1392_v60 }
  0x3d   : > { %1321 = vmatmul.msk.f32.gmra.mxu0 %vm406_vm0, %v390_v16  ;;  %1332 = vmatmul.msk.f32.gmra.mxu1 %vm406_vm0, %v388_v12 }
  0x3e   : > { %1347 = vmatmul.msk.f32.gmra.mxu2 %vm406_vm0, %v391_v17  ;;  %1361 = vmatmul.msk.f32.gmra.mxu3 %vm406_vm0, %v392_v18 }
  0x3f   : > { %817 = vmatpush.msra.mxu1 %v774_v59  ;;  %869 = vmatpush.msrb.mxu2 %v1391_v63 }
  0x41   : > { %818 = vmatpush.msra.mxu1 %v773_v62  ;;  %870 = vmatpush.msrb.mxu2 %v1390_v3 }
  0x43   : > { %819 = vmatpush.msra.mxu1 %v772_v2  ;;  %871 = vmatpush.msrb.mxu2 %v1389_v5 }
  0x45   : > { %1322 = vmatmul.msk.f32.gmra.mxu0 %vm406_vm0, %v391_v17  ;;  %1333 = vmatmul.msk.f32.gmra.mxu1 %vm406_vm0, %v389_v14 }
  0x46   : > { %1348 = vmatmul.msk.f32.gmra.mxu2 %vm406_vm0, %v392_v18  ;;  %1362 = vmatmul.msk.f32.gmra.mxu3 %vm406_vm0, %v393_v19 }
  0x47   : > { %820 = vmatpush.msra.mxu1 %v771_v4 }
  0x4d   : > { %1323 = vmatmul.msk.f32.gmra.mxu0 %vm406_vm0, %v392_v18  ;;  %1334 = vmatmul.msk.f32.gmra.mxu1 %vm406_vm0, %v390_v16 }
  0x4e   : > { %1349 = vmatmul.msk.f32.gmra.mxu2 %vm406_vm0, %v393_v19  ;;  %1363 = vmatmul.msk.f32.gmra.mxu3 %vm406_vm0, %v394_v20 }
  0x55   : > { %1324 = vmatmul.msk.f32.gmra.mxu0 %vm406_vm0, %v393_v19  ;;  %1335 = vmatmul.msk.f32.gmra.mxu1 %vm406_vm0, %v391_v17 }
  0x56   : > { %1350 = vmatmul.msk.f32.gmra.mxu2 %vm406_vm0, %v394_v20  ;;  %1364 = vmatmul.msk.f32.gmra.mxu3 %vm406_vm0, %v395_v21 }
  0x5d   : > { %1325 = vmatmul.msk.f32.gmra.mxu0 %vm406_vm0, %v394_v20  ;;  %1336 = vmatmul.msk.f32.gmra.mxu1 %vm406_vm0, %v392_v18 }
  0x5e   : > { %1351 = vmatmul.msk.f32.gmra.mxu2 %vm406_vm0, %v395_v21  ;;  %1365 = vmatmul.msk.f32.gmra.mxu3 %vm406_vm0, %v396_v22 }
  0x65   : > { %1326 = vmatmul.msk.f32.gmra.mxu0 %vm406_vm0, %v395_v21  ;;  %1337 = vmatmul.msk.f32.gmra.mxu1 %vm406_vm0, %v393_v19 }
  0x66   : > { %1352 = vmatmul.msk.f32.gmra.mxu2 %vm406_vm0, %v396_v22  ;;  %1366 = vmatmul.msk.f32.gmra.mxu3 %vm406_vm0, %v1714_v10 }
  0x6d   : > { %1327 = vmatmul.msk.f32.gmra.mxu0 %vm406_vm0, %v396_v22  ;;  %1338 = vmatmul.msk.f32.gmra.mxu1 %vm406_vm0, %v394_v20 }
  0x6e   : > { %1353 = vmatmul.msk.f32.gmra.mxu2 %vm406_vm0, %v1714_v10  ;;  %1367 = vmatmul.msk.f32.gmra.mxu3 %vm406_vm0, %v398_v23 }
  0x75   : > { %1339 = vmatmul.msk.f32.gmra.mxu1 %vm406_vm0, %v395_v21  ;;  %1371 = vmatmul.msk.f32.vlgmr.msrb.gmra.mxu0 %vm406_vm0, %v389_v14 }
  0x76   : > { %1354 = vmatmul.msk.f32.gmra.mxu2 %vm406_vm0, %v398_v23  ;;  %1368 = vmatmul.msk.f32.gmra.mxu3 %vm406_vm0, %v399_v24 }
  0x7d   : > { %1340 = vmatmul.msk.f32.gmra.mxu1 %vm406_vm0, %v396_v22  ;;  %1372 = vmatmul.msk.f32.gmra.mxu0 %vm406_vm0, %v390_v16 }
  0x85   : > { %1373 = vmatmul.msk.f32.gmra.mxu0 %vm406_vm0, %v391_v17 }
  0x8d   : > { %1374 = vmatmul.msk.f32.gmra.mxu0 %vm406_vm0, %v392_v18 }
  0x95   : > { %1375 = vmatmul.msk.f32.gmra.mxu0 %vm406_vm0, %v393_v19 }
  0x9a   : > { %v1788_v25 = vpop.f32.mrf.mxu0  ;;  %v1843_v43 = vpop.f32.mrf.mxu1 }
  0x9d   : > { %1376 = vmatmul.msk.f32.gmra.mxu0 %vm406_vm0, %v394_v20 }
  0xa1   : > { %v575_v56 = vpop.f32.mrf.mxu2  ;;  %v646_v61 = vpop.f32.mrf.mxu3 }
  0xa2   : > { %v1794_v27 = vpop.f32.mrf.mxu0  ;;  %v516_v50 = vpop.f32.mrf.mxu1 }
  0xa3   : > { %v517_v14 = vadd.f32 %v516_v50, %v1788_v25 }
  0xa5   : > { %1377 = vmatmul.msk.f32.gmra.mxu0 %vm406_vm0, %v395_v21  ;;  %v611_v18 = vadd.f32 %v575_v56, %v517_v14 }
  0xa9   : > { %v578_v6 = vpop.f32.mrf.mxu2  ;;  %v649_v7 = vpop.f32.mrf.mxu3 }
  0xaa   : > { %v1803_v30 = vpop.f32.mrf.mxu0  ;;  %v519_v0 = vpop.f32.mrf.mxu1 }
  0xab   : > { %v520_v15 = vadd.f32 %v519_v0, %v1794_v27 }
  0xad   : > { %1378 = vmatmul.msk.f32.gmra.mxu0 %vm406_vm0, %v396_v22  ;;  %v612_v19 = vadd.f32 %v578_v6, %v520_v15  ;;  %v682_v22 = vadd.f32 %v646_v61, %v611_v18 }
  0xb1   : > { %v652_v12 = vpop.f32.mrf.mxu3 }
  0xb2   : > { %v1812_v33 = vpop.f32.mrf.mxu0  ;;  %v522_v9 = vpop.f32.mrf.mxu1 }
  0xb3   : > { %v523_v27 = vadd.f32 %v522_v9, %v1803_v30 }
  0xb5   : > { %1379 = vmatmul.msk.f32.gmra.mxu0 %vm406_vm0, %v1714_v10  ;;  %v581_v10 = vpop.f32.mrf.mxu2 }
  0xb6   : > { %v613_v36 = vadd.f32 %v581_v10, %v523_v27 }
  0xb8   : > { %v684_v40 = vadd.f32 %v652_v12, %v613_v36 }
  0xb9   : > { %v655_v20 = vpop.f32.mrf.mxu3 }
  0xba   : > { %v1828_v38 = vpop.f32.mrf.mxu0  ;;  %v525_v13 = vpop.f32.mrf.mxu1 }
  0xbb   : > { %v526_v32 = vadd.f32 %v525_v13, %v1812_v33 }
  0xbd   : > { %1380 = vmatmul.msk.f32.gmra.mxu0 %vm406_vm0, %v398_v23  ;;  %v584_v16 = vpop.f32.mrf.mxu2  ;;  %v683_v23 = vadd.f32 %v649_v7, %v612_v19 }
  0xbe   : > { %v614_v37 = vadd.f32 %v584_v16, %v526_v32 }
  0xc0   : > { %v685_v42 = vadd.f32 %v655_v20, %v614_v37 }
  0xc1   : > { %v658_v25 = vpop.f32.mrf.mxu3 }
  0xc2   : > { %v1837_v41 = vpop.f32.mrf.mxu0  ;;  %v528_v21 = vpop.f32.mrf.mxu1 }
  0xc3   : > { %v529_v33 = vadd.f32 %v528_v21, %v1828_v38  ;;  %v1415_v21 = vld [vmem:[%s2157_s4 + $0x68] sm:$0xff] }
  0xc5   : > { %1381 = vmatmul.msk.f32.gmra.mxu0 %vm406_vm0, %v399_v24  ;;  %v587_v29 = vpop.f32.mrf.mxu2 }
  0xc6   : > { %v615_v55 = vadd.f32 %v587_v29, %v529_v33 }
  0xc8   : > { %v686_v58 = vadd.f32 %v658_v25, %v615_v55  ;;  %v1435_v55 = vld [vmem:[%s2157_s4 + $0xb8] sm:$0xf] }
  0xc9   : > { %v661_v44 = vpop.f32.mrf.mxu3  ;;  %1436 = vmatpush.msk.msrb.mxu1 %vm955_vm2, %v1435_v55  ;;  %v1080_v55 = vld [vmem:[%s2158_s5 + $0x38] sm:$0xff] }
  0xca   : > { %v1848_v45 = vpop.f32.mrf.mxu0  ;;  %v531_v34 = vpop.f32.mrf.mxu1 }
  0xcb   : > { %v532_v51 = vadd.f32 %v531_v34, %v1837_v41 }
  0xcd   : > { %1382 = vmatmul.msk.f32.gmra.mxu0 %vm406_vm0, %v400_v46  ;;  %v590_v39 = vpop.f32.mrf.mxu2 }
  0xce   : > { %v616_v56 = vadd.f32 %v590_v39, %v532_v51 }
  0xd0   : > { %v687_v59 = vadd.f32 %v661_v44, %v616_v56  ;;  %v1434_v56 = vld [vmem:[%s2157_s4 + $0xb0] sm:$0xff] }
  0xd1   : > { %v664_v54 = vpop.f32.mrf.mxu3  ;;  %1047 = vmatpush.msrb.mxu1 %v1434_v56  ;;  %v1079_v56 = vld [vmem:[%s2158_s5 + $0x30] sm:$0xff] }
  0xd2   : > { %v1867_v53 = vpop.f32.mrf.mxu0  ;;  %v534_v49 = vpop.f32.mrf.mxu1 }
  0xd3   : > { %v535_v41 = vadd.f32 %v534_v49, %v1848_v45  ;;  %v1417_v45 = vld [vmem:[%s2157_s4 + $0x78] sm:$0xf] }
  0xd4   : > { %1418 = vmatpush.msk.msrb.mxu3 %vm955_vm2, %v1417_v45 }
  0xd5   : > { %v593_v30 = vpop.f32.mrf.mxu2 }
  0xd6   : > { %v617_v6 = vadd.f32 %v593_v30, %v535_v41 }
  0xd8   : > { %v688_v10 = vadd.f32 %v664_v54, %v617_v6  ;;  %v1410_v54 = vld [vmem:[%s2157_s4 + $0x40] sm:$0xff] }
  0xd9   : > { %v667_v2 = vpop.f32.mrf.mxu3 }
  0xda   : > { %v1893_v1 = vpop.f32.mrf.mxu0  ;;  %v537_v57 = vpop.f32.mrf.mxu1 }
  0xdb   : > { %v538_v3 = vadd.f32 %v537_v57, %v1867_v53  ;;  %v1416_v53 = vld [vmem:[%s2157_s4 + $0x70] sm:$0xff]  ;;  %v1433_v57 = vld [vmem:[%s2157_s4 + $0xa8] sm:$0xff] }
  0xdc   : > { %968 = vmatpush.msrb.mxu3 %v1416_v53  ;;  %1048 = vmatpush.msrb.mxu1 %v1433_v57  ;;  %v1452_v57 = vld [vmem:[%s2158_s5 + $0x98] sm:$0xff] }
  0xdd   : > { %v596_v60 = vpop.f32.mrf.mxu2 }
  0xde   : > { %v618_v7 = vadd.f32 %v596_v60, %v538_v3  ;;  %969 = vmatpush.msrb.mxu3 %v1415_v21 }
  0xe0   : > { %v689_v12 = vadd.f32 %v667_v2, %v618_v7  ;;  %v1428_v2 = vld [vmem:[%s2157_s4 + $0x80] sm:$0xff] }
  0xe1   : > { %v670_v9 = vpop.f32.mrf.mxu3 }
  0xe2   : > { %v1907_v8 = vpop.f32.mrf.mxu0  ;;  %v540_v38 = vpop.f32.mrf.mxu1 }
  0xe3   : > { %v541_v19 = vadd.f32 %v540_v38, %v1893_v1  ;;  %v897_v38 = vld [vmem:[%s2156_s3] sm:$0x7] }
  0xe4   : > { %v911_v7 = vperm.slane %v897_v38, 1 }
  0xe5   : > { %v599_v5 = vpop.f32.mrf.mxu2 }
  0xea   : > { %v1909_v11 = vpop.f32.mrf.mxu0  ;;  %v543_v13 = vpop.f32.mrf.mxu1 }
  0xeb   : > { %v544_v20 = vadd.f32 %v543_v13, %v1907_v8  ;;  %v932_v13 = vld [vmem:[%s2157_s4 + $0x38] sm:$0xf] }
  0xed   : > { %v602_v18 = vpop.f32.mrf.mxu2 }
  0xee   : > { %v620_v29 = vadd.f32 %v602_v18, %v544_v20 }
  0xf2   : > { %v717_v17 = vpop.f32.mrf.mxu0 }
  0xf3   : > { %v753_v26 = vadd.f32 %v717_v17, %v682_v22  ;;  %v673_v22 = vpop.f32.mrf.mxu3 }
  0xf4   : > { %v691_v25 = vadd.f32 %v673_v22, %v620_v29  ;;  %v928_v22 = vld [vmem:[%s2157_s4 + $0x18] sm:$0xff] }
  0xfa   : > { %v720_v24 = vpop.f32.mrf.mxu0 }
  0xfb   : > { %v754_v28 = vadd.f32 %v720_v24, %v683_v23  ;;  %v1414_v24 = vld [vmem:[%s2157_s4 + $0x60] sm:$0xff]  ;;  %v676_v34 = vpop.f32.mrf.mxu3 }
  0xfc   : > { %970 = vmatpush.msrb.mxu3 %v1414_v24 }
  0xfd   : > { %v765_v31 = vmax.f32 %v753_v26, %v754_v28  ;;  %v546_v26 = vpop.f32.mrf.mxu1  ;;  %v619_v28 = vadd.f32 %v599_v5, %v541_v19 }
  0xfe   : > { %v547_v37 = vadd.f32 %v546_v26, %v1909_v11  ;;  %v1413_v11 = vld [vmem:[%s2157_s4 + $0x58] sm:$0xff]  ;;  %v926_v26 = vld [vmem:[%s2157_s4 + $0x8] sm:$0xff] }
  0xff   : > { %1383 = vmatmul.msk.f32.vlgmr.msra.gmra.mxu1 %vm786_vm1, %v765_v31  ;;  %1404 = vmatmul.msk.f32.vlgmr.msrb.gmra.mxu2 %vm786_vm1, %v765_v31  ;;  %v605_v31 = vpop.f32.mrf.mxu2  ;;  %v690_v1 = vadd.f32 %v670_v9, %v619_v28  ;;  %v925_v28 = vld [vmem:[%s2157_s4] sm:$0xff] }
 0x100   : > { %v621_v44 = vadd.f32 %v605_v31, %v547_v37  ;;  %971 = vmatpush.msrb.mxu3 %v1413_v11 }
 0x102   : > { %v723_v35 = vpop.f32.mrf.mxu0 }
 0x103   : > { %v755_v47 = vadd.f32 %v723_v35, %v684_v40 }
 0x105   : > { %v549_v36 = vpop.f32.mrf.mxu1 }
 0x106   : > { %v550_v39 = vadd.f32 %v549_v36, %v1843_v43  ;;  %v1412_v43 = vld [vmem:[%s2157_s4 + $0x50] sm:$0xff] }
 0x107   : > { %v608_v40 = vpop.f32.mrf.mxu2  ;;  %972 = vmatpush.msrb.mxu3 %v1412_v43 }
 0x10a   : > { %v726_v46 = vpop.f32.mrf.mxu0 }
 0x10b   : > { %v756_v48 = vadd.f32 %v726_v46, %v685_v42  ;;  %v622_v46 = vadd.f32 %v608_v40, %v550_v39 }
 0x10d   : > { %v766_v50 = vmax.f32 %v755_v47, %v756_v48  ;;  %v679_v47 = vpop.f32.mrf.mxu3  ;;  %v692_v48 = vadd.f32 %v676_v34, %v621_v44 }
 0x10e   : > { %v693_v49 = vadd.f32 %v679_v47, %v622_v46 }
 0x10f   : > { %1384 = vmatmul.msk.f32.gmra.mxu1 %vm786_vm1, %v766_v50  ;;  %1405 = vmatmul.msk.f32.gmra.mxu2 %vm786_vm1, %v766_v50 }
 0x112   : > { %v729_v52 = vpop.f32.mrf.mxu0 }
 0x113   : > { %v757_v62 = vadd.f32 %v729_v52, %v686_v58  ;;  %v1411_v52 = vld [vmem:[%s2157_s4 + $0x48] sm:$0xff] }
 0x114   : > { %973 = vmatpush.msrb.mxu3 %v1411_v52  ;;  %v1082_v52 = vld [vmem:[%s2158_s5 + $0x48] sm:$0xff] }
 0x115   : > { %1096 = vmatpush.msra.mxu2 %v1082_v52 }
 0x116   : > { %974 = vmatpush.msrb.mxu3 %v1410_v54  ;;  %v1081_v54 = vld [vmem:[%s2158_s5 + $0x40] sm:$0xff] }
 0x117   : > { %1097 = vmatpush.msra.mxu2 %v1081_v54 }
 0x118   : > { %1423 = vmatpush.msk.msra.mxu3 %vm955_vm2, %v932_v13 }
 0x119   : > { %1098 = vmatpush.msra.mxu2 %v1080_v55 }
 0x11a   : > { %v732_v61 = vpop.f32.mrf.mxu0 }
 0x11b   : > { %v758_v63 = vadd.f32 %v732_v61, %v687_v59  ;;  %v1432_v61 = vld [vmem:[%s2157_s4 + $0xa0] sm:$0xff]  ;;  %1099 = vmatpush.msra.mxu2 %v1079_v56 }
 0x11c   : > { %1049 = vmatpush.msrb.mxu1 %v1432_v61  ;;  %v1077_v61 = vld [vmem:[%s2158_s5 + $0x20] sm:$0xff] }
 0x11d   : > { %v767_v0 = vmax.f32 %v757_v62, %v758_v63  ;;  %v1431_v62 = vld [vmem:[%s2157_s4 + $0x98] sm:$0xff]  ;;  %v1430_v63 = vld [vmem:[%s2157_s4 + $0x90] sm:$0xff] }
 0x11e   : > { %1050 = vmatpush.msrb.mxu1 %v1431_v62 }
 0x11f   : > { %1385 = vmatmul.msk.f32.gmra.mxu1 %vm786_vm1, %v767_v0  ;;  %1406 = vmatmul.msk.f32.gmra.mxu2 %vm786_vm1, %v767_v0  ;;  %v1429_v0 = vld [vmem:[%s2157_s4 + $0x88] sm:$0xff] }
 0x120   : > { %1051 = vmatpush.msrb.mxu1 %v1430_v63  ;;  %v1449_v63 = vld [vmem:[%s2158_s5 + $0x80] sm:$0xff] }
 0x122   : > { %v735_v4 = vpop.f32.mrf.mxu0  ;;  %1052 = vmatpush.msrb.mxu1 %v1429_v0  ;;  %v1076_v0 = vld [vmem:[%s2158_s5 + $0x18] sm:$0xff] }
 0x123   : > { %v759_v15 = vadd.f32 %v735_v4, %v688_v10  ;;  %v898_v4 = vperm.slane %v897_v38, 0  ;;  %v918_v10 = vperm.slane %v897_v38, 2  ;;  %v1447_v38 = vld [vmem:[%s2158_s5 + $0x70] sm:$0xff] }
 0x124   : > { %1053 = vmatpush.msrb.mxu1 %v1428_v2  ;;  %v1448_v2 = vld [vmem:[%s2158_s5 + $0x78] sm:$0xff] }
 0x12a   : > { %v738_v14 = vpop.f32.mrf.mxu0 }
 0x12b   : > { %v760_v16 = vadd.f32 %v738_v14, %v689_v12  ;;  %v931_v14 = vld [vmem:[%s2157_s4 + $0x30] sm:$0xff] }
 0x12c   : > { %1003 = vmatpush.msra.mxu3 %v931_v14 }
 0x12d   : > { %v768_v17 = vmax.f32 %v759_v15, %v760_v16  ;;  %v930_v16 = vld [vmem:[%s2157_s4 + $0x28] sm:$0xff] }
 0x12e   : > { %1004 = vmatpush.msra.mxu3 %v930_v16 }
 0x12f   : > { %1386 = vmatmul.msk.f32.gmra.mxu1 %vm786_vm1, %v768_v17  ;;  %1407 = vmatmul.msk.f32.gmra.mxu2 %vm786_vm1, %v768_v17  ;;  %v929_v17 = vld [vmem:[%s2157_s4 + $0x20] sm:$0xff] }
 0x130   : > { %1005 = vmatpush.msra.mxu3 %v929_v17 }
 0x132   : > { %v741_v23 = vpop.f32.mrf.mxu0  ;;  %1006 = vmatpush.msra.mxu3 %v928_v22 }
 0x133   : > { %v761_v27 = vadd.f32 %v741_v23, %v690_v1  ;;  %v927_v23 = vld [vmem:[%s2157_s4 + $0x10] sm:$0xff] }
 0x134   : > { %1007 = vmatpush.msra.mxu3 %v927_v23 }
 0x136   : > { %1008 = vmatpush.msra.mxu3 %v926_v26 }
 0x138   : > { %1009 = vmatpush.msra.mxu3 %v925_v28 }
 0x13a   : > { %v744_v8 = vpop.f32.mrf.mxu0 }
 0x13b   : > { %v762_v32 = vadd.f32 %v744_v8, %v691_v25 }
 0x13d   : > { %v769_v35 = vmax.f32 %v761_v27, %v762_v32 }
 0x13f   : > { %1387 = vmatmul.msk.f32.gmra.mxu1 %vm786_vm1, %v769_v35  ;;  %1408 = vmatmul.msk.f32.gmra.mxu2 %vm786_vm1, %v769_v35 }
 0x142   : > { %v747_v42 = vpop.f32.mrf.mxu0 }
 0x143   : > { %v763_v30 = vadd.f32 %v747_v42, %v692_v48 }
 0x14a   : > { %v750_v50 = vpop.f32.mrf.mxu0 }
 0x14b   : > { %v764_v33 = vadd.f32 %v750_v50, %v693_v49 }
 0x14d   : > { %v770_v51 = vmax.f32 %v763_v30, %v764_v33 }
 0x14f   : > { %1388 = vmatmul.msk.f32.gmra.mxu1 %vm786_vm1, %v770_v51  ;;  %1409 = vmatmul.msk.f32.gmra.mxu2 %vm786_vm1, %v770_v51 }
 0x17c   : > { %v1970_v58 = vpop.f32.mrf.mxu1 }
 0x182   : > { %v1972_v59 = vpop.f32.mrf.mxu2 }
 0x183   : > { %v891_v60 = vmax.f32 %v1970_v58, %v1972_v59  ;;  %v1078_v58 = vld [vmem:[%s2158_s5 + $0x28] sm:$0xff]  ;;  %v1451_v59 = vld [vmem:[%s2158_s5 + $0x90] sm:$0xff] }
 0x184   : > { %1100 = vmatpush.msra.mxu2 %v1078_v58  ;;  %v1198_v58 = vld [vmem:[%s2162_s9] sm:$0xff] }
 0x185   : > { %v899_v39 = vadd.f32 %v898_v4, %v891_v60  ;;  %v1450_v60 = vld [vmem:[%s2158_s5 + $0x88] sm:$0xff] }
 0x186   : > { %1101 = vmatpush.msra.mxu2 %v1077_v61 }
 0x187   : > { %v905_v44 = vmax.f32 %v899_v39, 0.0  ;;  %v1149_v39 = vld [vmem:[%s2159_s6] sm:$0x7] }
 0x188   : > { %1102 = vmatpush.msra.mxu2 %v1076_v0 }
 0x189   : > { %v912_v47 = vmul.f32 %v911_v7, %v905_v44 }
 0x18b   : > { %v919_v50 = vadd.f32 %v918_v10, %v912_v47  ;;  %v1155_v47 = vperm.slane %v1149_v39, 1 }
 0x18c   : > { %v825_v41 = vpop.f32.mrf.mxu1 }
 0x192   : > { %v876_v3 = vpop.f32.mrf.mxu2 }
 0x193   : > { %v892_v5 = vmax.f32 %v825_v41, %v876_v3  ;;  %v1446_v41 = vld [vmem:[%s2158_s5 + $0x68] sm:$0xff] }
 0x195   : > { %v900_v6 = vadd.f32 %v898_v4, %v892_v5  ;;  %v1445_v5 = vld [vmem:[%s2158_s5 + $0x60] sm:$0xff] }
 0x197   : > { %v906_v9 = vmax.f32 %v900_v6, 0.0  ;;  %v1074_v6 = vld [vmem:[%s2158_s5 + $0x8] sm:$0xff] }
 0x199   : > { %v913_v12 = vmul.f32 %v911_v7, %v906_v9  ;;  %v1073_v9 = vld [vmem:[%s2158_s5] sm:$0xff] }
 0x19b   : > { %v920_v15 = vadd.f32 %v918_v10, %v913_v12 }
 0x19c   : > { %v828_v18 = vpop.f32.mrf.mxu1 }
 0x19d   : > { %1419 = vmatmul.msk.f32.vlgmr.msrb.gmra.mxu3 %vm942_vm3, %v920_v15 }
 0x19e   : > { %1130 = vmatpush.msrb.mxu3 %v1452_v57 }
 0x1a0   : > { %1131 = vmatpush.msrb.mxu3 %v1451_v59  ;;  %v1504_v59 = vld [vmem:[%s2161_s8] ss:$0 sm:$0xff] }
 0x1a2   : > { %v879_v45 = vpop.f32.mrf.mxu2  ;;  %1132 = vmatpush.msrb.mxu3 %v1450_v60 }
 0x1a3   : > { %v893_v53 = vmax.f32 %v828_v18, %v879_v45 }
 0x1a4   : > { %1133 = vmatpush.msrb.mxu3 %v1449_v63  ;;  %v1505_v63 = vld [vmem:[%s2163_s10] ss:$0 sm:$0xff] }
 0x1a5   : > { %v901_v19 = vadd.f32 %v898_v4, %v893_v53 }
 0x1a6   : > { %1134 = vmatpush.msrb.mxu3 %v1448_v2 }
 0x1a7   : > { %v907_v20 = vmax.f32 %v901_v19, 0.0 }
 0x1a8   : > { %1135 = vmatpush.msrb.mxu3 %v1447_v38 }
 0x1a9   : > { %v914_v21 = vmul.f32 %v911_v7, %v907_v20 }
 0x1aa   : > { %1136 = vmatpush.msrb.mxu3 %v1446_v41 }
 0x1ab   : > { %v921_v24 = vadd.f32 %v918_v10, %v914_v21 }
 0x1ac   : > { %v831_v29 = vpop.f32.mrf.mxu1  ;;  %1137 = vmatpush.msrb.mxu3 %v1445_v5 }
 0x1ad   : > { %1420 = vmatmul.msk.f32.gmra.mxu3 %vm942_vm3, %v921_v24  ;;  %1437 = vmatmul.msk.f32.vlgmr.msrb.gmra.mxu1 %vm942_vm3, %v921_v24 }
 0x1b2   : > { %v882_v31 = vpop.f32.mrf.mxu2 }
 0x1b3   : > { %v894_v1 = vmax.f32 %v831_v29, %v882_v31 }
 0x1b5   : > { %v902_v25 = vadd.f32 %v898_v4, %v894_v1 }
 0x1b7   : > { %v908_v8 = vmax.f32 %v902_v25, 0.0  ;;  %v1169_v25 = vld [vmem:[%s2160_s7 + $0x20] sm:$0xff] }
 0x1b9   : > { %v915_v27 = vmul.f32 %v911_v7, %v908_v8  ;;  %v1168_v8 = vld [vmem:[%s2160_s7 + $0x18] sm:$0xff] }
 0x1bb   : > { %v922_v32 = vadd.f32 %v918_v10, %v915_v27  ;;  %v1167_v27 = vld [vmem:[%s2160_s7 + $0x10] sm:$0xff] }
 0x1bc   : > { %v834_v34 = vpop.f32.mrf.mxu1 }
 0x1bd   : > { %1421 = vmatmul.msk.f32.gmra.mxu3 %vm942_vm3, %v922_v32  ;;  %1438 = vmatmul.msk.f32.gmra.mxu1 %vm942_vm3, %v922_v32 }
 0x1c2   : > { %v885_v35 = vpop.f32.mrf.mxu2 }
 0x1c3   : > { %v895_v36 = vmax.f32 %v834_v34, %v885_v35  ;;  %v1165_v34 = vld [vmem:[%s2160_s7] sm:$0xff]  ;;  %v1199_v35 = vld [vmem:[%s2162_s9 + $0x8] sm:$0x7f] }
 0x1c5   : > { %v903_v37 = vadd.f32 %v898_v4, %v895_v36 }
 0x1c7   : > { %v909_v40 = vmax.f32 %v903_v37, 0.0 }
 0x1c9   : > { %v916_v42 = vmul.f32 %v911_v7, %v909_v40 }
 0x1cb   : > { %v923_v46 = vadd.f32 %v918_v10, %v916_v42  ;;  %v1150_v42 = vperm.slane %v1149_v39, 0 }
 0x1cc   : > { %v837_v48 = vpop.f32.mrf.mxu1 }
 0x1cd   : > { %1422 = vmatmul.msk.f32.gmra.mxu3 %vm942_vm3, %v923_v46  ;;  %1439 = vmatmul.msk.f32.gmra.mxu1 %vm942_vm3, %v923_v46 }
 0x1d2   : > { %v888_v49 = vpop.f32.mrf.mxu2 }
 0x1d3   : > { %v896_v30 = vmax.f32 %v837_v48, %v888_v49 }
 0x1d5   : > { %v904_v33 = vadd.f32 %v898_v4, %v896_v30  ;;  %1424 = vmatmul.msk.f32.vlgmr.msra.gmra.mxu3 %vm942_vm3, %v919_v50  ;;  %v1075_v4 = vld [vmem:[%s2158_s5 + $0x10] sm:$0xff] }
 0x1d6   : > { %1103 = vmatpush.msra.mxu2 %v1075_v4 }
 0x1d7   : > { %v910_v51 = vmax.f32 %v904_v33, 0.0  ;;  %v1158_v33 = vperm.slane %v1149_v39, 2 }
 0x1d8   : > { %1104 = vmatpush.msra.mxu2 %v1074_v6 }
 0x1d9   : > { %v917_v11 = vmul.f32 %v911_v7, %v910_v51  ;;  %v1444_v7 = vld [vmem:[%s2158_s5 + $0x58] sm:$0xff] }
 0x1da   : > { %1138 = vmatpush.msrb.mxu3 %v1444_v7  ;;  %1105 = vmatpush.msra.mxu2 %v1073_v9 }
 0x1db   : > { %v924_v43 = vadd.f32 %v918_v10, %v917_v11  ;;  %v1443_v10 = vld [vmem:[%s2158_s5 + $0x50] sm:$0xff] }
 0x1dc   : > { %1139 = vmatpush.msrb.mxu3 %v1443_v10  ;;  %1188 = vmatpush.msrb.mxu2 %v1169_v25 }
 0x1dd   : > { %1425 = vmatmul.msk.f32.gmra.mxu3 %vm942_vm3, %v920_v15  ;;  %1440 = vmatmul.msk.f32.gmra.mxu1 %vm942_vm3, %v924_v43 }
 0x1de   : > { %1189 = vmatpush.msrb.mxu2 %v1168_v8 }
 0x1e0   : > { %1190 = vmatpush.msrb.mxu2 %v1167_v27 }
 0x1e5   : > { %1426 = vmatmul.msk.f32.gmra.mxu3 %vm942_vm3, %v921_v24 }
 0x1ed   : > { %1427 = vmatmul.msk.f32.gmra.mxu3 %vm942_vm3, %v922_v32  ;;  %v1166_v32 = vld [vmem:[%s2160_s7 + $0x8] sm:$0xff] }
 0x1ee   : > { %1191 = vmatpush.msrb.mxu2 %v1166_v32 }
 0x1f0   : > { %1192 = vmatpush.msrb.mxu2 %v1165_v34 }
 0x220   : > { %v976_v62 = vpop.f32.mrf.mxu3 }
 0x22a   : > { %v1055_v15 = vpop.f32.mrf.mxu1 }
 0x230   : > { %v979_v3 = vpop.f32.mrf.mxu3 }
 0x23a   : > { %v1058_v45 = vpop.f32.mrf.mxu1 }
 0x240   : > { %v982_v12 = vpop.f32.mrf.mxu3 }
 0x24a   : > { %v1061_v22 = vpop.f32.mrf.mxu1 }
 0x250   : > { %v985_v13 = vpop.f32.mrf.mxu3 }
 0x258   : > { %v1011_v14 = vpop.f32.mrf.mxu3 }
 0x259   : > { %v1012_v16 = vadd.f32 %v1011_v14, %v976_v62 }
 0x25a   : > { %v1064_v28 = vpop.f32.mrf.mxu1 }
 0x25b   : > { %v1067_v53 = vadd.f32 %v1055_v15, %v1012_v16 }
 0x260   : > { %v1014_v17 = vpop.f32.mrf.mxu3 }
 0x261   : > { %v1015_v18 = vadd.f32 %v1014_v17, %v979_v3 }
 0x263   : > { %v1068_v19 = vadd.f32 %v1058_v45, %v1015_v18 }
 0x265   : > { %v1071_v20 = vmax.f32 %v1067_v53, %v1068_v19 }
 0x267   : > { %1441 = vmatmul.msk.f32.vlgmr.msra.gmra.mxu2 %vm1083_vm4, %v1071_v20  ;;  %1453 = vmatmul.msk.f32.vlgmr.msrb.gmra.mxu3 %vm1083_vm4, %v1071_v20 }
 0x268   : > { %v1017_v21 = vpop.f32.mrf.mxu3  ;;  %1456 = vmatpush.msk.msra.mxu2 %vm1208_vm5, %v1199_v35 }
 0x269   : > { %v1018_v23 = vadd.f32 %v1017_v21, %v982_v12 }
 0x26a   : > { %1227 = vmatpush.msra.mxu2 %v1198_v58 }
 0x26b   : > { %v1069_v29 = vadd.f32 %v1061_v22, %v1018_v23 }
 0x270   : > { %v1020_v24 = vpop.f32.mrf.mxu3 }
 0x271   : > { %v1021_v26 = vadd.f32 %v1020_v24, %v985_v13 }
 0x273   : > { %v1070_v31 = vadd.f32 %v1064_v28, %v1021_v26 }
 0x275   : > { %v1072_v1 = vmax.f32 %v1069_v29, %v1070_v31 }
 0x277   : > { %1442 = vmatmul.msk.f32.gmra.mxu2 %vm1083_vm4, %v1072_v1  ;;  %1454 = vmatmul.msk.f32.gmra.mxu3 %vm1083_vm4, %v1072_v1 }
 0x2ea   : > { %v1107_v36 = vpop.f32.mrf.mxu2  ;;  %v1141_v37 = vpop.f32.mrf.mxu3 }
 0x2eb   : > { %v1147_v40 = vmax.f32 %v1107_v36, %v1141_v37 }
 0x2ed   : > { %v1151_v44 = vadd.f32 %v1150_v42, %v1147_v40 }
 0x2ef   : > { %v1153_v46 = vmax.f32 %v1151_v44, 0.0 }
 0x2f1   : > { %v1156_v30 = vmul.f32 %v1155_v47, %v1153_v46 }
 0x2f3   : > { %v1159_v43 = vadd.f32 %v1158_v33, %v1156_v30 }
 0x2f5   : > { %v1162_v55 = vsel %vm1161_vm6, %v1159_v43, 0.0 }
 0x2fa   : > { %v1110_v48 = vpop.f32.mrf.mxu2  ;;  %v1144_v49 = vpop.f32.mrf.mxu3 }
 0x2fb   : > { %v1148_v50 = vmax.f32 %v1110_v48, %v1144_v49 }
 0x2fd   : > { %v1152_v51 = vadd.f32 %v1150_v42, %v1148_v50 }
 0x2ff   : > { %v1154_v11 = vmax.f32 %v1152_v51, 0.0 }
 0x301   : > { %v1157_v52 = vmul.f32 %v1155_v47, %v1154_v11 }
 0x303   : > { %v1160_v54 = vadd.f32 %v1158_v33, %v1157_v52 }
 0x305   : > { %v1163_v56 = vsel %vm1161_vm6, %v1160_v54, 0.0 }
 0x306   : > { %v1164_v57 = vadd.f32 %v1163_v56, %v1162_v55 }
 0x308   : > { %1455 = vmatmul.msk.f32.vlgmr.msrb.gmra.mxu2 %vm1161_vm6, %v1164_v57 }
 0x38b   : > { %v1194_v60 = vpop.f32.mrf.mxu2 }
 0x38c   : > { %v1195_v61 = vadd.f32 %v1504_v59, %v1194_v60 }
 0x38e   : > { %v1197_v62 = vmax.f32 %v1195_v61, 0.0 }
 0x390   : > { %1457 = vmatmul.msk.f32.vlgmr.msra.gmra.mxu2 %vm1204_vm7, %v1197_v62 }
 0x413   : > { %v1229_v0 = vpop.f32.mrf.mxu2 }
 0x414   : > { %v1230_v2 = vadd.f32 %v1505_v63, %v1229_v0 }
 0x416   : > { %1232 = vst [vmem:[%s379_s25] sm:$0xff] %v1230_v2 }
 0x417   : > { %1533 = shalt.err (!%p1530_p3)
}
 0x418   : > { %1465 = dma.vmem_to_hbm [thread:$0]  (%p1668_p5), %s1247_s16, 128, %s1249_s22, %s1234_s0  }
 0x419 PF: > { %p1471_p4 = scmp.ge.s32.totalorder %s1568_s20, 2  ;;  %s1260_s24 = sand.u32 1, %s1556_s17  }
 0x41a   : > { %s1261_s13 = scalar_lea.sflag [#allocation3], %s1260_s24 }
 0x41b   : > { %p1468_p7 = pnand %p1471_p4, %p1672_p6 }
 0x41d   : > { %p1469_p8 = pneg %p1468_p7 }
 0x41f   : > { %1551 = dma.done.wait (%p1469_p8), %s1261_s13, 128  }
 0x420   : > { %1553 = vsyncadd (%p1469_p8), %s1261_s13, 4294967168  ;;  %s2172_s1 = sld [smem:[#allocation5_spill]]  ;;  %p21_p9 = scmp.ge.s32.totalorder %s1655_s23, 4  }
 0x421   : > { %s2173_s17 = smov %s1560_s18  ;;  %s2174_s18 = smov %s1564_s19 }
 0x422   : > { %s2176_s20 = smov %s1655_s23  ;;  %23 = sbr.rel (!%p21_p9) target bundleno = 6 (0x6), region = 107 }
 0x426   : > { %s2175_s19 = smov %s2172_s1 }
 0x427   :  { %1267 = vsyncpa [#allocation3], 1 }
 0x428   :  { %1269 = vsyncpa [#allocation3 + $0x1], 1 }

</bundles_post_ra>
